<compile_context>
chip_gen: v7x
topology: tpu7x:2x2x1
jax: 0.10.0
libtpu: 0.0.40
codegen_flags: <defaults>
</compile_context>

<pallas_src>
import functools

import jax
import jax.numpy as jnp
from jax.experimental import pallas as pl
from jax.experimental.pallas import tpu as pltpu


def _ce_ls_kernel(x_ref, t_ref, o_ref, *, epsilon, num_classes, actual_b,
                  block_b, lane_dense_out, need_mask, use_mxu_reductions):
    """Per-row label-smoothed CE for one (block_b, C) batch tile.

    Fused form (no materialized one-hot, no materialized `shifted` temp):
      m        = rowmax(x)
      lse      = log(rowsum(exp(x - m)))
      x_t      = rowsum(where(class == target, x, 0))
      rowsum_x = rowsum(x)
      loss     = ((1-eps) + C*eps/num_classes) * lse
                 - (1-eps) * (x_t - m)
                 - (eps/num_classes) * (rowsum_x - C*m)
    """
    x = x_ref[...].astype(jnp.float32)                      # (TB, C) f32
    tb, c = x.shape

    m = jnp.max(x, axis=1, keepdims=True)                   # (TB, 1)
    e = jnp.exp(x - m)                                      # (x - m) fuses into EUP feed

    class_ids = jax.lax.broadcasted_iota(jnp.int32, (tb, c), 1)
    hit = class_ids == t_ref[...]                           # (TB, C) bool
    x_masked = jnp.where(hit, x, 0.0)                       # (TB, C)

    if use_mxu_reductions:
        # MXU is otherwise idle; offload the big lane reductions to it so the
        # VPU/XLU slots stay free for the elementwise work (v7x, bf16-on-v6e).
        ones = jnp.ones((c, 1), jnp.float32)
        sum_exp = jnp.dot(e, ones, preferred_element_type=jnp.float32)
        rowsum_x = jnp.dot(x, ones, preferred_element_type=jnp.float32)
        x_t = jnp.dot(x_masked, ones, preferred_element_type=jnp.float32)
    else:
        sum_exp = jnp.sum(e, axis=1, keepdims=True)
        rowsum_x = jnp.sum(x, axis=1, keepdims=True)
        x_t = jnp.sum(x_masked, axis=1, keepdims=True)

    lse = jnp.log(sum_exp)                                  # (TB, 1)
    smooth = epsilon / num_classes
    lse_coef = (1.0 - epsilon) + float(c) * smooth
    loss = (lse_coef * lse
            - (1.0 - epsilon) * (x_t - m)
            - smooth * (rowsum_x - float(c) * m))           # (TB, 1)

    if need_mask:
        # Ragged last tile: rows past the real batch hold garbage; zero them.
        row_ids = (pl.program_id(0) * block_b
                   + jax.lax.broadcasted_iota(jnp.int32, (tb, 1), 0))
        loss = jnp.where(row_ids < actual_b, loss, 0.0)

    if lane_dense_out:
        o_ref[...] = loss.reshape(1, tb)                    # lane-dense (1, TB)
    else:
        o_ref[...] = loss                                   # (TB, 1)


def _tpu_kind():
    try:
        d = jax.devices()[0]
        if d.platform == "tpu":
            return d.device_kind.lower()
    except Exception:
        pass
    return ""


def _pick_block_b(batch, classes, itemsize, kind):
    """Largest batch tile whose VMEM footprint (2x double-buffered HBM-dtype
    logits blocks + ~3 f32 in-kernel (TB,C) temporaries) fits the per-chip
    budget: ~40 MiB on v7x (64 MiB physical VMEM), ~80 MiB on v5e/v6e
    (128 MiB physical VMEM)."""
    is_v7 = "v7" in kind
    budget_bytes = (40 if is_v7 else 80) * 1024 * 1024
    per_row = classes * (2 * itemsize + 3 * 4) + 256
    rows = max(8, budget_bytes // max(per_row, 1))
    if is_v7 and batch >= 256:
        # v7x has 2 TensorCores: keep >= 2 grid tiles so "parallel" can shard.
        rows = min(rows, -(-batch // 2))
    if rows >= batch:
        return batch                                   # single tile
    if rows >= 128:
        return int((rows // 128) * 128)                # lane-dense output tiles
    return int(max(8, (rows // 8) * 8))                # huge-C fallback


def cross_entropy_label_smooth(inputs, targets, *, num_classes, epsilon=0.1,
                               size_average=True, block_b=None,
                               use_mxu_reductions=None):
    """Pallas TPU implementation of CrossEntropyLabelSmooth.forward.

    inputs:  (B, C) float logits (bf16 is read as-is and upcast in-kernel)
    targets: (B,) integer class indices (out-of-range ids contribute only the
             uniform eps/num_classes term, like jax.nn.one_hot; PyTorch's
             scatter_ would raise instead).
    """
    batch, classes = inputs.shape
    targets_2d = targets.astype(jnp.int32).reshape(batch, 1)
    kind = _tpu_kind()
    itemsize = jnp.dtype(inputs.dtype).itemsize

    tb = int(block_b) if block_b is not None else _pick_block_b(
        batch, classes, itemsize, kind)
    tb = min(tb, batch)
    if tb < batch:
        tb = max(8, (tb // 8) * 8)          # multi-tile blocks must be 8-aligned
    n_tiles = -(-batch // tb)
    need_mask = n_tiles * tb != batch       # ragged last tile -> in-kernel mask

    if use_mxu_reductions is None:
        use_mxu_reductions = ("v7" in kind) or (inputs.dtype != jnp.float32)

    lane_dense = (tb % 128 == 0)
    if lane_dense:
        out_shape = jax.ShapeDtypeStruct((1, batch), jnp.float32)
        out_spec = pl.BlockSpec((1, tb), lambda i: (0, i))
    else:
        out_shape = jax.ShapeDtypeStruct((batch, 1), jnp.float32)
        out_spec = pl.BlockSpec((tb, 1), lambda i: (i, 0))

    # Explicit VMEM budget: 2x double-buffered input blocks + f32 temporaries.
    est = (2 * tb * classes * itemsize      # logits blocks (HBM dtype)
           + 2 * tb * 128 * 4               # target blocks (lane padded)
           + 3 * tb * classes * 4           # in-kernel f32 temps (x, exp, masked)
           + 8 * tb * 4 + (2 << 20))        # row reductions + slack
    cap = (48 if "v7" in kind else 100) * 1024 * 1024
    vmem_limit = int(min(max(est, 32 * 1024 * 1024), cap))

    kernel = functools.partial(
        _ce_ls_kernel,
        epsilon=float(epsilon), num_classes=float(num_classes),
        actual_b=int(batch), block_b=int(tb),
        lane_dense_out=lane_dense, need_mask=need_mask,
        use_mxu_reductions=bool(use_mxu_reductions))

    per_row = pl.pallas_call(
        kernel,
        out_shape=out_shape,
        grid_spec=pltpu.PrefetchScalarGridSpec(
            num_scalar_prefetch=0,
            grid=(n_tiles,),
            in_specs=[pl.BlockSpec((tb, classes), lambda i: (i, 0)),
                      pl.BlockSpec((tb, 1), lambda i: (i, 0))],
            out_specs=out_spec),
        compiler_params=pltpu.CompilerParams(
            dimension_semantics=("parallel",),
            vmem_limit_bytes=vmem_limit),
    )(inputs, targets_2d)

    per_row = per_row.reshape(-1)
    if size_average:
        # (-tgt * log_probs).mean(0).sum() == sum(per-row losses) / B.
        return jnp.sum(per_row) / jnp.float32(batch)
    return per_row


def _reference(inputs, targets, *, num_classes, epsilon=0.1, size_average=True):
    x = inputs.astype(jnp.float32)
    log_probs = jax.nn.log_softmax(x, axis=1)
    onehot = jax.nn.one_hot(targets, x.shape[1], dtype=jnp.float32)
    smoothed = (1.0 - epsilon) * onehot + epsilon / num_classes
    if size_average:
        return (-smoothed * log_probs).mean(0).sum()
    return (-smoothed * log_probs).sum(1)


if __name__ == "__main__":
    key = jax.random.PRNGKey(0)

    # (B, C, dtype, block_b): exercise tiny single-tile, ragged multi-tile
    # (in-kernel masking, no HBM pad), lane-dense multi-tile, auto-tiled
    # ragged, and bf16/MXU-reduction paths — all at small shapes.
    configs = [
        (2, 4, jnp.float32, None),      # tiny, block == full array dims
        (8, 32, jnp.float32, None),     # single tile
        (40, 96, jnp.float32, 16),      # 3 ragged tiles, masked rows, no pad
        (256, 128, jnp.float32, 128),   # lane-dense (1, TB) output tiles
        (300, 64, jnp.float32, 100),    # auto-rounded tile (96), ragged tail
        (16, 200, jnp.bfloat16, None),  # bf16 logits -> MXU-offloaded rowsums
    ]

    for idx, (b, c, dt, blk) in enumerate(configs):
        k1, k2, key = jax.random.split(key, 3)
        logits = jax.random.normal(k1, (b, c), dtype=jnp.float32).astype(dt)
        labels = jax.random.randint(k2, (b,), 0, c, dtype=jnp.int32)
        tol = 1e-5 if dt == jnp.float32 else 1e-3
        for size_average in (True, False):
            got = cross_entropy_label_smooth(
                logits, labels, num_classes=c, epsilon=0.1,
                size_average=size_average, block_b=blk)
            got = jax.block_until_ready(got)
            want = _reference(logits, labels, num_classes=c, epsilon=0.1,
                              size_average=size_average)
            assert jnp.allclose(got, want, rtol=tol, atol=tol), (
                f"mismatch: config={idx} size_average={size_average} "
                f"got={got} want={want}")

    print("KERNEL_OK")
</pallas_src>

<mosaic_0001>
module attributes {stable_mosaic.version = 11 : i64} {
  func.func @_ce_ls_kernel(%arg0: i32, %arg1: memref<2x4xf32, #tpu.memory_space<vmem>>, %arg2: memref<2x1xi32, #tpu.memory_space<vmem>>, %arg3: memref<2x1xf32, #tpu.memory_space<vmem>>) attributes {dimension_semantics = [#tpu.dimension_semantics<parallel>], iteration_bounds = array<i64: 1>, scalar_prefetch = 0 : i64, scratch_operands = 0 : i64, tpu.core_type = #tpu.core_type<tc>, window_params = [{transform_indices = @transform_0, window_bounds = array<i64: 2, 4>}, {transform_indices = @transform_1, window_bounds = array<i64: 2, 1>}, {transform_indices = @transform_2, window_bounds = array<i64: 2, 1>}]} {
    %c0 = arith.constant 0 : index
    %c0_0 = arith.constant 0 : index
    %0 = vector.load %arg1[%c0, %c0_0] : memref<2x4xf32, #tpu.memory_space<vmem>>, vector<2x4xf32>
    %cst = arith.constant dense<0xFF800000> : vector<2xf32>
    %1 = vector.multi_reduction <maximumf>, %0, %cst [1] : vector<2x4xf32> to vector<2xf32>
    %2 = vector.shape_cast %1 : vector<2xf32> to vector<2x1xf32>
    %3 = vector.broadcast %2 : vector<2x1xf32> to vector<2x4xf32>
    %4 = arith.subf %0, %3 : vector<2x4xf32>
    %5 = math.exp %4 : vector<2x4xf32>
    %6 = tpu.iota {dimensions = array<i32: 1>} : vector<2x4xi32>
    %c0_1 = arith.constant 0 : index
    %c0_2 = arith.constant 0 : index
    %7 = vector.load %arg2[%c0_1, %c0_2] : memref<2x1xi32, #tpu.memory_space<vmem>>, vector<2x1xi32>
    %8 = vector.broadcast %7 : vector<2x1xi32> to vector<2x4xi32>
    %9 = arith.cmpi eq, %6, %8 : vector<2x4xi32>
    %cst_3 = arith.constant 0.000000e+00 : f32
    %10 = vector.broadcast %cst_3 : f32 to vector<2x4xf32>
    %11 = arith.select %9, %0, %10 : vector<2x4xi1>, vector<2x4xf32>
    %cst_4 = arith.constant dense<0.000000e+00> : vector<2xf32>
    %12 = vector.multi_reduction <add>, %5, %cst_4 [1] : vector<2x4xf32> to vector<2xf32>
    %13 = vector.shape_cast %12 : vector<2xf32> to vector<2x1xf32>
    %cst_5 = arith.constant dense<0.000000e+00> : vector<2xf32>
    %14 = vector.multi_reduction <add>, %0, %cst_5 [1] : vector<2x4xf32> to vector<2xf32>
    %15 = vector.shape_cast %14 : vector<2xf32> to vector<2x1xf32>
    %cst_6 = arith.constant dense<0.000000e+00> : vector<2xf32>
    %16 = vector.multi_reduction <add>, %11, %cst_6 [1] : vector<2x4xf32> to vector<2xf32>
    %17 = vector.shape_cast %16 : vector<2xf32> to vector<2x1xf32>
    %18 = math.log %13 : vector<2x1xf32>
    %cst_7 = arith.constant 1.000000e+00 : f32
    %19 = vector.broadcast %cst_7 : f32 to vector<2x1xf32>
    %20 = arith.mulf %19, %18 : vector<2x1xf32>
    %21 = arith.subf %17, %2 : vector<2x1xf32>
    %cst_8 = arith.constant 0.899999976 : f32
    %22 = vector.broadcast %cst_8 : f32 to vector<2x1xf32>
    %23 = arith.mulf %22, %21 : vector<2x1xf32>
    %24 = arith.subf %20, %23 : vector<2x1xf32>
    %cst_9 = arith.constant 4.000000e+00 : f32
    %25 = vector.broadcast %cst_9 : f32 to vector<2x1xf32>
    %26 = arith.mulf %25, %2 : vector<2x1xf32>
    %27 = arith.subf %15, %26 : vector<2x1xf32>
    %cst_10 = arith.constant 2.500000e-02 : f32
    %28 = vector.broadcast %cst_10 : f32 to vector<2x1xf32>
    %29 = arith.mulf %28, %27 : vector<2x1xf32>
    %30 = arith.subf %24, %29 : vector<2x1xf32>
    %c0_11 = arith.constant 0 : index
    %c0_12 = arith.constant 0 : index
    %31 = vector.load %arg3[%c0_11, %c0_12] : memref<2x1xf32, #tpu.memory_space<vmem>>, vector<2x1xf32>
    tpu.vector_store %arg3[%c0_11, %c0_12], %30 {strides = array<i32>} : memref<2x1xf32, #tpu.memory_space<vmem>>, vector<2x1xf32>,
    return
  }
  func.func @transform_0(%arg0: i32) -> (i32, i32) {
    %c0_i32 = arith.constant 0 : i32
    %c0_i32_0 = arith.constant 0 : i32
    return %arg0, %c0_i32 : i32, i32
  }
  func.func @transform_1(%arg0: i32) -> (i32, i32) {
    %c0_i32 = arith.constant 0 : i32
    %c0_i32_0 = arith.constant 0 : i32
    return %arg0, %c0_i32 : i32, i32
  }
  func.func @transform_2(%arg0: i32) -> (i32, i32) {
    %c0_i32 = arith.constant 0 : i32
    %c0_i32_0 = arith.constant 0 : i32
    return %arg0, %c0_i32 : i32, i32
  }
}

</mosaic_0001>

<bundles_post_ra>
// kernel: tpu_custom_call.1
= control target key start
LH: loop header
LB: loop body
LE: loop exit
PB: predicated region body
PF: predicated region fallthrough
CT: control target
= control target key end

     0   :  { %vm12_vm0 = vcmask 25600   ;;  %v57_v1 = vmov 0   ;;  %v19_v7 = vlaneseq  ;;  %vm45_vm2 = vcmask 1024   ;;  %s86_s0 = inlined_call_operand.vmem [shape: f32[2,4], index: 0, kind: input, shape index: {}]   ;;  %s87_s1 = inlined_call_operand.vmem [shape: s32[2,1], index: 1, kind: input, shape index: {}]   ;;  %s88_s2 = inlined_call_operand.vmem [shape: f32[2,1], index: 2, kind: output, shape index: {}]  }
   0x1   :  { %v11_v0 = vld [vmem:[%s86_s0] sm:$0x3]  ;;  %52 = vset.pattern.permute.xlu0 %v57_v1 }
   0x2   :  { %v13_v2 = vsel %vm12_vm0, %v11_v0, -inf  ;;  %v21_v3 = vld [vmem:[%s87_s1] sm:$0x3]  ;;  %v20_v8 = vand.u32 127, %v19_v7  ;;  %v30_v14 = vsel %vm12_vm0, %v11_v0, 0.0 }
   0x3   :  { %14 = vmax.xlane.f32.xlu0 %v13_v2 }
  0x19   :  { %23 = vperm.xlu0 %52, %v21_v3  }
  0x90   :  { %v15_v4 = vpop.xlane.xlu0 %14 }
  0x91   :  { %v16_v5 = vsub.f32 %v11_v0, %v15_v4  ;;  %v41_v18 = vmul.f32 4.0, %v15_v4 }
  0x93   :  { %v17_v6 = vmul.f32 1.442695, %v16_v5 }
  0x95   :  { %53 = vpow2.f32 %v17_v6 }
  0x98   :  { %v24_v9 = vpop.permute.xlu0 %23 }
  0x99   :  { %vm25_vm1 = vcmp.eq.s32.totalorder %v20_v8, %v24_v9 }
  0x9a   :  { %v26_v11 = vsel %vm25_vm1, %v11_v0, 0.0 }
  0x9b   :  { %v33_v13 = vsel %vm12_vm0, %v26_v11, 0.0 }
  0x9f   :  { %v54_v10 = vpop.eup %53 }
  0xa0   :  { %v27_v12 = vsel %vm12_vm0, %v54_v10, 0.0 }
  0xa1   :  { %28 = vadd.xlane.f32.xlu1 %v27_v12 }
  0xa5   :  { %34 = vadd.xlane.f32.xlu1 %v33_v13 }
  0xa9   :  { %31 = vadd.xlane.f32.xlu1 %v30_v14 }
 0x12e   :  { %v29_v15 = vpop.xlane.xlu1 %28 }
 0x12f   :  { %55 = vlog2.f32 %v29_v15 }
 0x132   :  { %v35_v16 = vpop.xlane.xlu1 %34 }
 0x133   :  { %v38_v17 = vsub.f32 %v35_v16, %v15_v4 }
 0x135   :  { %v39_v23 = vmul.f32 0.9, %v38_v17 }
 0x136   :  { %v32_v19 = vpop.xlane.xlu1 %31 }
 0x137   :  { %v42_v20 = vsub.f32 %v32_v19, %v41_v18 }
 0x139   :  { %v56_v21 = vpop.eup %55  ;;  %v43_v25 = vmul.f32 0.025, %v42_v20 }
 0x13a   :  { %v37_v22 = vmul.f32 0.6931472, %v56_v21 }
 0x13c   :  { %v40_v24 = vsub.f32 %v37_v22, %v39_v23 }
 0x13e   :  { %v44_v26 = vsub.f32 %v40_v24, %v43_v25 }
 0x140   :  { %46 = vst.msk [vmem:[%s88_s2] sm:$0x3] %vm45_vm2, %v44_v26 }

</bundles_post_ra>
